<compile_context>
chip_gen: v6e
topology: v6e:2x2x1
jax: 0.10.0
libtpu: 0.0.40
codegen_flags: <defaults>
</compile_context>

<pallas_src>
import functools

import jax
import jax.numpy as jnp
from jax.experimental import pallas as pl
from jax.experimental.pallas import tpu as pltpu

FP = 128  # padded feature width (TPU lane dimension)


def _sage_layer_kernel(a_ref, xs_ref, xk_ref, ws_ref, wn_ref, b_ref, o_ref,
                       acc_ref, *, relu):
    """One SAGEConv('mean') layer.

    grid = (i, k):
      i : tile of output rows (destination nodes)      -> "parallel" (megacore)
      k : tile of the source-node reduction of A @ X   -> "arbitrary"

    a_ref  : [tm, tk] bf16  degree-normalized adjacency tile (streamed)
    xs_ref : [tm, FP] bf16  node features of the current i tile (self term)
    xk_ref : [tk, FP] bf16  node features of the current k tile (aggregation)
    ws_ref : [FP, FP] bf16  W_self  (padded, [in, out] layout, resident)
    wn_ref : [FP, FP] bf16  W_neigh (padded, [in, out] layout, resident)
    b_ref  : [1, FP]  f32   bias (padded, resident)
    o_ref  : [tm, FP]       output row tile
    acc_ref: [tm, FP] f32   aggregation accumulator (VMEM scratch)
    """
    k = pl.program_id(1)
    nk = pl.num_programs(1)

    @pl.when(k == 0)
    def _():
        acc_ref[...] = jnp.zeros_like(acc_ref)

    # mean aggregation: acc += A[i-tile, k-tile] @ X[k-tile, :]   (f32 acc)
    acc_ref[...] += jnp.dot(a_ref[...], xk_ref[...],
                            preferred_element_type=jnp.float32)

    # finalize: self + neighbor projections, f32 bias (+ ReLU) epilogue
    @pl.when(k == nk - 1)
    def _():
        h_neigh = acc_ref[...].astype(jnp.bfloat16)
        out = jnp.dot(xs_ref[...], ws_ref[...],
                      preferred_element_type=jnp.float32)
        out += jnp.dot(h_neigh, wn_ref[...],
                       preferred_element_type=jnp.float32)
        out = out + b_ref[...]
        if relu:
            out = jnp.maximum(out, 0.0)
        o_ref[...] = out.astype(o_ref.dtype)


def _vmem_limit_bytes(tm, tk):
    """Size the scoped VMEM limit from the actual (double-buffered) footprint."""
    dbl = 2  # BlockSpec double buffering
    need = (tm * tk * 2 * dbl        # adjacency tile (bf16)
            + tk * FP * 2 * dbl      # xk tile (bf16)
            + tm * FP * 2 * dbl      # xs tile (bf16)
            + 2 * FP * FP * 2 * dbl  # two weight matrices (bf16)
            + 8 * FP * 4 * dbl       # bias (sublane-padded, f32)
            + tm * FP * 4 * dbl      # output tile (<= f32)
            + tm * FP * 4)           # accumulator scratch (f32)
    # generous headroom, but never above the smallest physical VMEM (v7x 64 MiB)
    return int(min(64 << 20, max(2 * need + (4 << 20), 32 << 20)))


def _sage_layer(a_bf16, x_pad, w_self, w_neigh, bias, *, relu, out_dtype,
                tm, tk):
    n = a_bf16.shape[0]
    grid = (n // tm, n // tk)

    out_itemsize = 4 if out_dtype == jnp.float32 else 2
    flops = 2 * n * n * FP + 4 * n * FP * FP
    bytes_accessed = (n * n * 2                      # adjacency (bf16), dominant
                      + (n // tm) * n * FP * 2       # xk re-streamed per i tile
                      + n * FP * 2                   # xs
                      + 2 * FP * FP * 2              # weights
                      + n * FP * out_itemsize)       # output

    return pl.pallas_call(
        functools.partial(_sage_layer_kernel, relu=relu),
        out_shape=jax.ShapeDtypeStruct((n, FP), out_dtype),
        grid_spec=pltpu.PrefetchScalarGridSpec(
            num_scalar_prefetch=0,
            grid=grid,
            in_specs=[
                pl.BlockSpec((tm, tk), lambda i, k: (i, k)),   # A (streamed)
                pl.BlockSpec((tm, FP), lambda i, k: (i, 0)),   # self rows
                pl.BlockSpec((tk, FP), lambda i, k: (k, 0)),   # aggregation rows
                pl.BlockSpec((FP, FP), lambda i, k: (0, 0)),   # W_self  (resident)
                pl.BlockSpec((FP, FP), lambda i, k: (0, 0)),   # W_neigh (resident)
                pl.BlockSpec((1, FP), lambda i, k: (0, 0)),    # bias    (resident)
            ],
            out_specs=pl.BlockSpec((tm, FP), lambda i, k: (i, 0)),
            scratch_shapes=[pltpu.VMEM((tm, FP), jnp.float32)],
        ),
        compiler_params=pltpu.CompilerParams(
            dimension_semantics=("parallel", "arbitrary"),
            vmem_limit_bytes=_vmem_limit_bytes(tm, tk)),
        cost_estimate=pl.CostEstimate(
            flops=flops, transcendentals=0, bytes_accessed=bytes_accessed),
    )(a_bf16, x_pad, x_pad, w_self, w_neigh, bias)


def _pad2(a, rows, cols):
    return jnp.pad(a, ((0, rows - a.shape[0]), (0, cols - a.shape[1])))


def graphsage_forward(a_norm, x, params):
    """Two-layer GraphSAGE: relu between layers, no activation at the end."""
    n = a_norm.shape[0]
    h_feats = params["w_self1"].shape[1]
    assert n % 128 == 0, "node count must be a multiple of 128 (pad the graph)"

    tm = min(512, n)    # output-row tile (sharded across TensorCores on v7x)
    tk = min(2048, n)   # aggregation-reduction tile (amortizes per-step cost)
    assert n % tm == 0 and n % tk == 0

    # Host-side packing: pad feature dims to FP lanes, cast MXU operands to bf16.
    a_bf16 = a_norm.astype(jnp.bfloat16)
    # TODO(synk): on v7x the adjacency stream could be stored in fp8 (e4m3) to
    # halve the dominant HBM traffic; kept bf16 here for v5e/v6e portability.
    x_pad = _pad2(x, n, FP).astype(jnp.bfloat16)
    ws1 = _pad2(params["w_self1"], FP, FP).astype(jnp.bfloat16)
    wn1 = _pad2(params["w_neigh1"], FP, FP).astype(jnp.bfloat16)
    ws2 = _pad2(params["w_self2"], FP, FP).astype(jnp.bfloat16)
    wn2 = _pad2(params["w_neigh2"], FP, FP).astype(jnp.bfloat16)
    b1 = _pad2(params["b1"], 1, FP).astype(jnp.float32)
    b2 = _pad2(params["b2"], 1, FP).astype(jnp.float32)

    # layer 1: conv1 + ReLU; hidden kept bf16 (it feeds the next layer's MXU)
    h1 = _sage_layer(a_bf16, x_pad, ws1, wn1, b1,
                     relu=True, out_dtype=jnp.bfloat16, tm=tm, tk=tk)
    # layer 2: conv2, no activation, f32 output
    out = _sage_layer(a_bf16, h1, ws2, wn2, b2,
                      relu=False, out_dtype=jnp.float32, tm=tm, tk=tk)
    return out[:, :h_feats]


def build_normalized_adjacency(key, num_nodes, edge_prob=0.1):
    """Dense random directed graph, rows normalized by in-degree (DGL 'mean')."""
    adj = (jax.random.uniform(key, (num_nodes, num_nodes)) < edge_prob).astype(
        jnp.float32
    )
    adj = adj * (1.0 - jnp.eye(num_nodes, dtype=jnp.float32))  # no self loops
    in_deg = jnp.sum(adj, axis=1, keepdims=True)               # in-degree per row
    return adj / jnp.maximum(in_deg, 1.0)                      # zero rows stay 0


def init_params(key, in_feats, h_feats):
    k = jax.random.split(key, 6)
    scale1 = 1.0 / jnp.sqrt(in_feats)
    scale2 = 1.0 / jnp.sqrt(h_feats)
    return {
        # layer 1: in_feats -> h_feats   (stored as [in, out] = W^T of nn.Linear)
        "w_self1": scale1 * jax.random.normal(k[0], (in_feats, h_feats), jnp.float32),
        "w_neigh1": scale1 * jax.random.normal(k[1], (in_feats, h_feats), jnp.float32),
        "b1": scale1 * jax.random.normal(k[2], (1, h_feats), jnp.float32),
        # layer 2: h_feats -> h_feats
        "w_self2": scale2 * jax.random.normal(k[3], (h_feats, h_feats), jnp.float32),
        "w_neigh2": scale2 * jax.random.normal(k[4], (h_feats, h_feats), jnp.float32),
        "b2": scale2 * jax.random.normal(k[5], (1, h_feats), jnp.float32),
    }


def reference_forward(a_norm, x, params, mxu_dtype=None):
    """Pure-JAX reference. If mxu_dtype is set, matmul operands are cast to it
    (mirrors the kernel's bf16 MXU inputs with f32 accumulation)."""
    if mxu_dtype is None:
        c = lambda t: t
    else:
        c = lambda t: t.astype(mxu_dtype).astype(jnp.float32)

    def layer(xx, ws, wn, b, relu):
        hn = c(a_norm) @ c(xx)
        out = c(xx) @ c(ws) + c(hn) @ c(wn) + b
        return jnp.maximum(out, 0.0) if relu else out

    h = layer(x, params["w_self1"], params["w_neigh1"], params["b1"], True)
    return layer(h, params["w_self2"], params["w_neigh2"], params["b2"], False)


if __name__ == "__main__":
    num_nodes = 128
    in_feats = 16
    h_feats = 32

    root = jax.random.PRNGKey(0)
    k_adj, k_feat, k_par = jax.random.split(root, 3)

    a_norm = build_normalized_adjacency(k_adj, num_nodes)
    x = jax.random.normal(k_feat, (num_nodes, in_feats), jnp.float32)
    params = init_params(k_par, in_feats, h_feats)

    fwd = jax.jit(graphsage_forward)
    out = fwd(a_norm, x, params)
    out = jax.block_until_ready(out)
    assert out.shape == (num_nodes, h_feats)

    # Tight check against a reference using the same bf16 MXU operands.
    ref_bf16 = reference_forward(a_norm, x, params, mxu_dtype=jnp.bfloat16)
    assert jnp.allclose(out, ref_bf16, atol=1e-2, rtol=1e-2)

    # Semantics check against the original float32 math (bf16 error bound).
    ref_f32 = reference_forward(a_norm, x, params)
    assert jnp.allclose(out, ref_f32, atol=1e-1, rtol=1e-1)

    print("KERNEL_OK")
</pallas_src>

<mosaic_0001>
module attributes {stable_mosaic.version = 11 : i64} {
  func.func @_sage_layer_kernel(%arg0: i32, %arg1: i32, %arg2: memref<128x128xbf16, #tpu.memory_space<vmem>>, %arg3: memref<128x128xbf16, #tpu.memory_space<vmem>>, %arg4: memref<128x128xbf16, #tpu.memory_space<vmem>>, %arg5: memref<128x128xbf16, #tpu.memory_space<vmem>>, %arg6: memref<128x128xbf16, #tpu.memory_space<vmem>>, %arg7: memref<1x128xf32, #tpu.memory_space<vmem>>, %arg8: memref<128x128xf32, #tpu.memory_space<vmem>>, %arg9: memref<128x128xf32, #tpu.memory_space<vmem>>) attributes {dimension_semantics = [#tpu.dimension_semantics<parallel>, #tpu.dimension_semantics<arbitrary>], iteration_bounds = array<i64: 1, 1>, scalar_prefetch = 0 : i64, scratch_operands = 1 : i64, tpu.core_type = #tpu.core_type<tc>, window_params = [{transform_indices = @transform_0, window_bounds = array<i64: 128, 128>}, {transform_indices = @transform_1, window_bounds = array<i64: 128, 128>}, {transform_indices = @transform_2, window_bounds = array<i64: 128, 128>}, {pipeline_mode = #tpu.pipeline_mode<synchronous>, transform_indices = @transform_3, window_bounds = array<i64: 128, 128>}, {pipeline_mode = #tpu.pipeline_mode<synchronous>, transform_indices = @transform_4, window_bounds = array<i64: 128, 128>}, {pipeline_mode = #tpu.pipeline_mode<synchronous>, transform_indices = @transform_5, window_bounds = array<i64: 1, 128>}, {transform_indices = @transform_6, window_bounds = array<i64: 128, 128>}]} {
    %c0_i32 = arith.constant 0 : i32
    %0 = arith.cmpi eq, %arg1, %c0_i32 : i32
    %1 = arith.extui %0 : i1 to i32
    %c0_i32_0 = arith.constant 0 : i32
    %2 = arith.cmpi ne, %1, %c0_i32_0 : i32
    scf.if %2 {
      %cst_10 = arith.constant 0.000000e+00 : f32
      %12 = vector.broadcast %cst_10 : f32 to vector<128x128xf32>
      %c0_11 = arith.constant 0 : index
      %c0_12 = arith.constant 0 : index
      %13 = vector.load %arg9[%c0_11, %c0_12] : memref<128x128xf32, #tpu.memory_space<vmem>>, vector<128x128xf32>
      tpu.vector_store %arg9[%c0_11, %c0_12], %12 {strides = array<i32>} : memref<128x128xf32, #tpu.memory_space<vmem>>, vector<128x128xf32>,
    } else {
    }
    %c0 = arith.constant 0 : index
    %c0_1 = arith.constant 0 : index
    %3 = vector.load %arg9[%c0, %c0_1] : memref<128x128xf32, #tpu.memory_space<vmem>>, vector<128x128xf32>
    %c0_2 = arith.constant 0 : index
    %c0_3 = arith.constant 0 : index
    %4 = vector.load %arg2[%c0_2, %c0_3] : memref<128x128xbf16, #tpu.memory_space<vmem>>, vector<128x128xbf16>
    %c0_4 = arith.constant 0 : index
    %c0_5 = arith.constant 0 : index
    %5 = vector.load %arg4[%c0_4, %c0_5] : memref<128x128xbf16, #tpu.memory_space<vmem>>, vector<128x128xbf16>
    %cst = arith.constant dense<0.000000e+00> : vector<128x128xf32>
    %6 = tpu.matmul %4, %5, %cst {dimension_numbers = #tpu.dot_dimension_numbers<[1], [0], [0], [1], [0, 0, 1, 1], [], []>} : vector<128x128xbf16>, vector<128x128xbf16>, vector<128x128xf32> -> vector<128x128xf32>
    %7 = arith.addf %3, %6 : vector<128x128xf32>
    %c0_6 = arith.constant 0 : index
    %c0_7 = arith.constant 0 : index
    %8 = vector.load %arg9[%c0_6, %c0_7] : memref<128x128xf32, #tpu.memory_space<vmem>>, vector<128x128xf32>
    tpu.vector_store %arg9[%c0_6, %c0_7], %7 {strides = array<i32>} : memref<128x128xf32, #tpu.memory_space<vmem>>, vector<128x128xf32>,
    %c0_i32_8 = arith.constant 0 : i32
    %9 = arith.cmpi eq, %arg1, %c0_i32_8 : i32
    %10 = arith.extui %9 : i1 to i32
    %c0_i32_9 = arith.constant 0 : i32
    %11 = arith.cmpi ne, %10, %c0_i32_9 : i32
    scf.if %11 {
      %c0_10 = arith.constant 0 : index
      %c0_11 = arith.constant 0 : index
      %12 = vector.load %arg9[%c0_10, %c0_11] : memref<128x128xf32, #tpu.memory_space<vmem>>, vector<128x128xf32>
      %13 = arith.truncf %12 : vector<128x128xf32> to vector<128x128xbf16>
      %c0_12 = arith.constant 0 : index
      %c0_13 = arith.constant 0 : index
      %14 = vector.load %arg3[%c0_12, %c0_13] : memref<128x128xbf16, #tpu.memory_space<vmem>>, vector<128x128xbf16>
      %c0_14 = arith.constant 0 : index
      %c0_15 = arith.constant 0 : index
      %15 = vector.load %arg5[%c0_14, %c0_15] : memref<128x128xbf16, #tpu.memory_space<vmem>>, vector<128x128xbf16>
      %cst_16 = arith.constant dense<0.000000e+00> : vector<128x128xf32>
      %16 = tpu.matmul %14, %15, %cst_16 {dimension_numbers = #tpu.dot_dimension_numbers<[1], [0], [0], [1], [0, 0, 1, 1], [], []>} : vector<128x128xbf16>, vector<128x128xbf16>, vector<128x128xf32> -> vector<128x128xf32>
      %c0_17 = arith.constant 0 : index
      %c0_18 = arith.constant 0 : index
      %17 = vector.load %arg6[%c0_17, %c0_18] : memref<128x128xbf16, #tpu.memory_space<vmem>>, vector<128x128xbf16>
      %cst_19 = arith.constant dense<0.000000e+00> : vector<128x128xf32>
      %18 = tpu.matmul %13, %17, %cst_19 {dimension_numbers = #tpu.dot_dimension_numbers<[1], [0], [0], [1], [0, 0, 1, 1], [], []>} : vector<128x128xbf16>, vector<128x128xbf16>, vector<128x128xf32> -> vector<128x128xf32>
      %19 = arith.addf %16, %18 : vector<128x128xf32>
      %c0_20 = arith.constant 0 : index
      %c0_21 = arith.constant 0 : index
      %20 = vector.load %arg7[%c0_20, %c0_21] : memref<1x128xf32, #tpu.memory_space<vmem>>, vector<1x128xf32>
      %21 = vector.broadcast %20 : vector<1x128xf32> to vector<128x128xf32>
      %22 = arith.addf %19, %21 : vector<128x128xf32>
      %c0_22 = arith.constant 0 : index
      %c0_23 = arith.constant 0 : index
      %23 = vector.load %arg8[%c0_22, %c0_23] : memref<128x128xf32, #tpu.memory_space<vmem>>, vector<128x128xf32>
      tpu.vector_store %arg8[%c0_22, %c0_23], %22 {strides = array<i32>} : memref<128x128xf32, #tpu.memory_space<vmem>>, vector<128x128xf32>,
    } else {
    }
    return
  }
  func.func @transform_0(%arg0: i32, %arg1: i32) -> (i32, i32) {
    %c0_i32 = arith.constant 0 : i32
    return %arg0, %arg1 : i32, i32
  }
  func.func @transform_1(%arg0: i32, %arg1: i32) -> (i32, i32) {
    %c0_i32 = arith.constant 0 : i32
    %c0_i32_0 = arith.constant 0 : i32
    return %arg0, %c0_i32 : i32, i32
  }
  func.func @transform_2(%arg0: i32, %arg1: i32) -> (i32, i32) {
    %c0_i32 = arith.constant 0 : i32
    %c0_i32_0 = arith.constant 0 : i32
    return %arg1, %c0_i32 : i32, i32
  }
  func.func @transform_3(%arg0: i32, %arg1: i32) -> (i32, i32) {
    %c0_i32 = arith.constant 0 : i32
    %c0_i32_0 = arith.constant 0 : i32
    %c0_i32_1 = arith.constant 0 : i32
    return %c0_i32, %c0_i32_0 : i32, i32
  }
  func.func @transform_4(%arg0: i32, %arg1: i32) -> (i32, i32) {
    %c0_i32 = arith.constant 0 : i32
    %c0_i32_0 = arith.constant 0 : i32
    %c0_i32_1 = arith.constant 0 : i32
    return %c0_i32, %c0_i32_0 : i32, i32
  }
  func.func @transform_5(%arg0: i32, %arg1: i32) -> (i32, i32) {
    %c0_i32 = arith.constant 0 : i32
    %c0_i32_0 = arith.constant 0 : i32
    %c0_i32_1 = arith.constant 0 : i32
    return %c0_i32, %c0_i32_0 : i32, i32
  }
  func.func @transform_6(%arg0: i32, %arg1: i32) -> (i32, i32) {
    %c0_i32 = arith.constant 0 : i32
    %c0_i32_0 = arith.constant 0 : i32
    return %arg0, %c0_i32 : i32, i32
  }
}

module attributes {stable_mosaic.version = 11 : i64} {
  func.func @_sage_layer_kernel(%arg0: i32, %arg1: i32, %arg2: memref<128x128xbf16, #tpu.memory_space<vmem>>, %arg3: memref<128x128xbf16, #tpu.memory_space<vmem>>, %arg4: memref<128x128xbf16, #tpu.memory_space<vmem>>, %arg5: memref<128x128xbf16, #tpu.memory_space<vmem>>, %arg6: memref<128x128xbf16, #tpu.memory_space<vmem>>, %arg7: memref<1x128xf32, #tpu.memory_space<vmem>>, %arg8: memref<128x128xbf16, #tpu.memory_space<vmem>>, %arg9: memref<128x128xf32, #tpu.memory_space<vmem>>) attributes {dimension_semantics = [#tpu.dimension_semantics<parallel>, #tpu.dimension_semantics<arbitrary>], iteration_bounds = array<i64: 1, 1>, scalar_prefetch = 0 : i64, scratch_operands = 1 : i64, tpu.core_type = #tpu.core_type<tc>, window_params = [{transform_indices = @transform_0, window_bounds = array<i64: 128, 128>}, {transform_indices = @transform_1, window_bounds = array<i64: 128, 128>}, {transform_indices = @transform_2, window_bounds = array<i64: 128, 128>}, {pipeline_mode = #tpu.pipeline_mode<synchronous>, transform_indices = @transform_3, window_bounds = array<i64: 128, 128>}, {pipeline_mode = #tpu.pipeline_mode<synchronous>, transform_indices = @transform_4, window_bounds = array<i64: 128, 128>}, {pipeline_mode = #tpu.pipeline_mode<synchronous>, transform_indices = @transform_5, window_bounds = array<i64: 1, 128>}, {transform_indices = @transform_6, window_bounds = array<i64: 128, 128>}]} {
    %c0_i32 = arith.constant 0 : i32
    %0 = arith.cmpi eq, %arg1, %c0_i32 : i32
    %1 = arith.extui %0 : i1 to i32
    %c0_i32_0 = arith.constant 0 : i32
    %2 = arith.cmpi ne, %1, %c0_i32_0 : i32
    scf.if %2 {
      %cst_10 = arith.constant 0.000000e+00 : f32
      %12 = vector.broadcast %cst_10 : f32 to vector<128x128xf32>
      %c0_11 = arith.constant 0 : index
      %c0_12 = arith.constant 0 : index
      %13 = vector.load %arg9[%c0_11, %c0_12] : memref<128x128xf32, #tpu.memory_space<vmem>>, vector<128x128xf32>
      tpu.vector_store %arg9[%c0_11, %c0_12], %12 {strides = array<i32>} : memref<128x128xf32, #tpu.memory_space<vmem>>, vector<128x128xf32>,
    } else {
    }
    %c0 = arith.constant 0 : index
    %c0_1 = arith.constant 0 : index
    %3 = vector.load %arg9[%c0, %c0_1] : memref<128x128xf32, #tpu.memory_space<vmem>>, vector<128x128xf32>
    %c0_2 = arith.constant 0 : index
    %c0_3 = arith.constant 0 : index
    %4 = vector.load %arg2[%c0_2, %c0_3] : memref<128x128xbf16, #tpu.memory_space<vmem>>, vector<128x128xbf16>
    %c0_4 = arith.constant 0 : index
    %c0_5 = arith.constant 0 : index
    %5 = vector.load %arg4[%c0_4, %c0_5] : memref<128x128xbf16, #tpu.memory_space<vmem>>, vector<128x128xbf16>
    %cst = arith.constant dense<0.000000e+00> : vector<128x128xf32>
    %6 = tpu.matmul %4, %5, %cst {dimension_numbers = #tpu.dot_dimension_numbers<[1], [0], [0], [1], [0, 0, 1, 1], [], []>} : vector<128x128xbf16>, vector<128x128xbf16>, vector<128x128xf32> -> vector<128x128xf32>
    %7 = arith.addf %3, %6 : vector<128x128xf32>
    %c0_6 = arith.constant 0 : index
    %c0_7 = arith.constant 0 : index
    %8 = vector.load %arg9[%c0_6, %c0_7] : memref<128x128xf32, #tpu.memory_space<vmem>>, vector<128x128xf32>
    tpu.vector_store %arg9[%c0_6, %c0_7], %7 {strides = array<i32>} : memref<128x128xf32, #tpu.memory_space<vmem>>, vector<128x128xf32>,
    %c0_i32_8 = arith.constant 0 : i32
    %9 = arith.cmpi eq, %arg1, %c0_i32_8 : i32
    %10 = arith.extui %9 : i1 to i32
    %c0_i32_9 = arith.constant 0 : i32
    %11 = arith.cmpi ne, %10, %c0_i32_9 : i32
    scf.if %11 {
      %c0_10 = arith.constant 0 : index
      %c0_11 = arith.constant 0 : index
      %12 = vector.load %arg9[%c0_10, %c0_11] : memref<128x128xf32, #tpu.memory_space<vmem>>, vector<128x128xf32>
      %13 = arith.truncf %12 : vector<128x128xf32> to vector<128x128xbf16>
      %c0_12 = arith.constant 0 : index
      %c0_13 = arith.constant 0 : index
      %14 = vector.load %arg3[%c0_12, %c0_13] : memref<128x128xbf16, #tpu.memory_space<vmem>>, vector<128x128xbf16>
      %c0_14 = arith.constant 0 : index
      %c0_15 = arith.constant 0 : index
      %15 = vector.load %arg5[%c0_14, %c0_15] : memref<128x128xbf16, #tpu.memory_space<vmem>>, vector<128x128xbf16>
      %cst_16 = arith.constant dense<0.000000e+00> : vector<128x128xf32>
      %16 = tpu.matmul %14, %15, %cst_16 {dimension_numbers = #tpu.dot_dimension_numbers<[1], [0], [0], [1], [0, 0, 1, 1], [], []>} : vector<128x128xbf16>, vector<128x128xbf16>, vector<128x128xf32> -> vector<128x128xf32>
      %c0_17 = arith.constant 0 : index
      %c0_18 = arith.constant 0 : index
      %17 = vector.load %arg6[%c0_17, %c0_18] : memref<128x128xbf16, #tpu.memory_space<vmem>>, vector<128x128xbf16>
      %cst_19 = arith.constant dense<0.000000e+00> : vector<128x128xf32>
      %18 = tpu.matmul %13, %17, %cst_19 {dimension_numbers = #tpu.dot_dimension_numbers<[1], [0], [0], [1], [0, 0, 1, 1], [], []>} : vector<128x128xbf16>, vector<128x128xbf16>, vector<128x128xf32> -> vector<128x128xf32>
      %19 = arith.addf %16, %18 : vector<128x128xf32>
      %c0_20 = arith.constant 0 : index
      %c0_21 = arith.constant 0 : index
      %20 = vector.load %arg7[%c0_20, %c0_21] : memref<1x128xf32, #tpu.memory_space<vmem>>, vector<1x128xf32>
      %21 = vector.broadcast %20 : vector<1x128xf32> to vector<128x128xf32>
      %22 = arith.addf %19, %21 : vector<128x128xf32>
      %cst_22 = arith.constant 0.000000e+00 : f32
      %23 = vector.broadcast %cst_22 : f32 to vector<128x128xf32>
      %24 = arith.maximumf %22, %23 : vector<128x128xf32>
      %25 = arith.truncf %24 : vector<128x128xf32> to vector<128x128xbf16>
      %c0_23 = arith.constant 0 : index
      %c0_24 = arith.constant 0 : index
      %26 = vector.load %arg8[%c0_23, %c0_24] : memref<128x128xbf16, #tpu.memory_space<vmem>>, vector<128x128xbf16>
      tpu.vector_store %arg8[%c0_23, %c0_24], %25 {strides = array<i32>} : memref<128x128xbf16, #tpu.memory_space<vmem>>, vector<128x128xbf16>,
    } else {
    }
    return
  }
  func.func @transform_0(%arg0: i32, %arg1: i32) -> (i32, i32) {
    %c0_i32 = arith.constant 0 : i32
    return %arg0, %arg1 : i32, i32
  }
  func.func @transform_1(%arg0: i32, %arg1: i32) -> (i32, i32) {
    %c0_i32 = arith.constant 0 : i32
    %c0_i32_0 = arith.constant 0 : i32
    return %arg0, %c0_i32 : i32, i32
  }
  func.func @transform_2(%arg0: i32, %arg1: i32) -> (i32, i32) {
    %c0_i32 = arith.constant 0 : i32
    %c0_i32_0 = arith.constant 0 : i32
    return %arg1, %c0_i32 : i32, i32
  }
  func.func @transform_3(%arg0: i32, %arg1: i32) -> (i32, i32) {
    %c0_i32 = arith.constant 0 : i32
    %c0_i32_0 = arith.constant 0 : i32
    %c0_i32_1 = arith.constant 0 : i32
    return %c0_i32, %c0_i32_0 : i32, i32
  }
  func.func @transform_4(%arg0: i32, %arg1: i32) -> (i32, i32) {
    %c0_i32 = arith.constant 0 : i32
    %c0_i32_0 = arith.constant 0 : i32
    %c0_i32_1 = arith.constant 0 : i32
    return %c0_i32, %c0_i32_0 : i32, i32
  }
  func.func @transform_5(%arg0: i32, %arg1: i32) -> (i32, i32) {
    %c0_i32 = arith.constant 0 : i32
    %c0_i32_0 = arith.constant 0 : i32
    %c0_i32_1 = arith.constant 0 : i32
    return %c0_i32, %c0_i32_0 : i32, i32
  }
  func.func @transform_6(%arg0: i32, %arg1: i32) -> (i32, i32) {
    %c0_i32 = arith.constant 0 : i32
    %c0_i32_0 = arith.constant 0 : i32
    return %arg0, %c0_i32 : i32, i32
  }
}

</mosaic_0001>

<bundles_post_ra>
// kernel: graphsage_forward.3
= control target key start
LH: loop header
LB: loop body
LE: loop exit
PB: predicated region body
PF: predicated region fallthrough
CT: control target
= control target key end

     0   :  { %s1286_s2 = inlined_call_operand.vmem [shape: bf16[128,128], index: 2, kind: input, shape index: {}, may-alias: {1,2}]   ;;  %s1287_s0 = inlined_call_operand.vmem [shape: bf16[128,128], index: 0, kind: input, shape index: {}]   ;;  %s1288_s4 = inlined_call_operand.vmem [shape: bf16[128,128], index: 4, kind: input, shape index: {}]   ;;  %s1289_s3 = inlined_call_operand.vmem [shape: bf16[128,128], index: 3, kind: input, shape index: {}]   ;;  %s1290_s1 = inlined_call_operand.vmem [shape: bf16[128,128], index: 1, kind: input, shape index: {}, may-alias: {1,2}]   ;;  %s1291_s5 = inlined_call_operand.vmem [shape: f32[1,128], index: 5, kind: input, shape index: {}]   ;;  %s1292_s6 = inlined_call_operand.vmem [shape: f32[128,128], index: 6, kind: output, shape index: {}]  }
   0x1   :  { %v974_v0 = vld [vmem:[%s1286_s2 + $0x38] sm:$0xff]   ;;  %v975_v1 = vld [vmem:[%s1286_s2 + $0x30] sm:$0xff]   ;;  %v976_v2 = vld [vmem:[%s1286_s2 + $0x28] sm:$0xff]  }
   0x2   :  { %862 = vmatprep.subr.bf16.mxu0 %v974_v0  ;;  %v977_v3 = vld [vmem:[%s1286_s2 + $0x20] sm:$0xff]   ;;  %v978_v5 = vld [vmem:[%s1286_s2 + $0x18] sm:$0xff]   ;;  %v979_v6 = vld [vmem:[%s1286_s2 + $0x10] sm:$0xff]  }
   0x3   :  { %863 = vmatpush3.bf16.msra.mxu0 %v974_v0  ;;  %v982_v4 = vld [vmem:[%s1287_s0] sm:$0xff]   ;;  %v990_v7 = vld [vmem:[%s1288_s4 + $0x38] sm:$0xff]   ;;  %v992_v8 = vld [vmem:[%s1288_s4 + $0x30] sm:$0xff]  }
   0x4   :  { %864 = vmatprep.subr.bf16.mxu0 %v975_v1  ;;  %878 = vmatprep.mubr.bf16.mxu0 %v982_v4  ;;  %v980_v9 = vld [vmem:[%s1286_s2 + $0x8] sm:$0xff]   ;;  %v981_v11 = vld [vmem:[%s1286_s2] sm:$0xff]   ;;  %v1091_v13 = vld [vmem:[%s1289_s3 + $0x38] sm:$0xff]  }
   0x5   :  { %894 = vmatprep.subr.bf16.mxu1 %v990_v7  ;;  %v994_v10 = vld [vmem:[%s1288_s4 + $0x28] sm:$0xff]   ;;  %v996_v12 = vld [vmem:[%s1288_s4 + $0x20] sm:$0xff]   ;;  %v998_v14 = vld [vmem:[%s1288_s4 + $0x18] sm:$0xff]  }
   0x6   :  { %895 = vmatpush3.bf16.msra.mxu1 %v990_v7  ;;  %v983_v15 = vld [vmem:[%s1287_s0 + $0x8] sm:$0xff]   ;;  %v984_v16 = vld [vmem:[%s1287_s0 + $0x10] sm:$0xff]   ;;  %v985_v20 = vld [vmem:[%s1287_s0 + $0x18] sm:$0xff]  }
   0x7   :  { %865 = vmatpush3.bf16.msra.mxu0 %v975_v1  ;;  %896 = vmatprep.subr.bf16.mxu1 %v992_v8  ;;  %v1106_v17 = vld [vmem:[%s1289_s3 + $0x30] sm:$0xff]   ;;  %v1116_v19 = vld [vmem:[%s1289_s3 + $0x28] sm:$0xff]   ;;  %v986_v21 = vld [vmem:[%s1287_s0 + $0x20] sm:$0xff]  }
   0x8   :  { %866 = vmatprep.subr.bf16.mxu0 %v976_v2  ;;  %v1000_v18 = vld [vmem:[%s1288_s4 + $0x10] sm:$0xff]   ;;  %v1129_v22 = vld [vmem:[%s1289_s3 + $0x20] sm:$0xff]   ;;  %v1136_v23 = vld [vmem:[%s1289_s3 + $0x18] sm:$0xff]  }
   0x9   :  { %v987_v24 = vld [vmem:[%s1287_s0 + $0x28] sm:$0xff]   ;;  %v988_v25 = vld [vmem:[%s1287_s0 + $0x30] sm:$0xff]   ;;  %v989_v27 = vld [vmem:[%s1287_s0 + $0x38] sm:$0xff]  }
   0xa   :  { %897 = vmatpush3.bf16.msra.mxu1 %v992_v8  ;;  %v1149_v26 = vld [vmem:[%s1289_s3 + $0x10] sm:$0xff]   ;;  %v1002_v28 = vld [vmem:[%s1288_s4 + $0x8] sm:$0xff]   ;;  %v1004_v30 = vld [vmem:[%s1288_s4] sm:$0xff]  }
   0xb   :  { %867 = vmatpush3.bf16.msra.mxu0 %v976_v2  ;;  %898 = vmatprep.subr.bf16.mxu1 %v994_v10  ;;  %v1163_v29 = vld [vmem:[%s1289_s3 + $0x8] sm:$0xff]   ;;  %v1173_v31 = vld [vmem:[%s1289_s3] sm:$0xff]   ;;  %v1008_v34 = vld [vmem:[%s1290_s1 + $0x10] sm:$0xff]  }
   0xc   :  { %868 = vmatprep.subr.bf16.mxu0 %v977_v3  ;;  %v1006_v32 = vld [vmem:[%s1290_s1] sm:$0xff]   ;;  %v1007_v33 = vld [vmem:[%s1290_s1 + $0x8] sm:$0xff]   ;;  %v1009_v35 = vld [vmem:[%s1290_s1 + $0x18] sm:$0xff]  }
   0xd   :  { %v1010_v59 = vld [vmem:[%s1290_s1 + $0x20] sm:$0xff]   ;;  %v1011_v61 = vld [vmem:[%s1290_s1 + $0x28] sm:$0xff]   ;;  %v1012_v62 = vld [vmem:[%s1290_s1 + $0x30] sm:$0xff]  }
   0xe   :  { %899 = vmatpush3.bf16.msra.mxu1 %v994_v10  ;;  %v1013_v63 = vld [vmem:[%s1290_s1 + $0x38] sm:$0xff]  }
   0xf   :  { %869 = vmatpush3.bf16.msra.mxu0 %v977_v3  ;;  %900 = vmatprep.subr.bf16.mxu1 %v996_v12 }
  0x10   :  { %870 = vmatprep.subr.bf16.mxu0 %v978_v5 }
  0x12   :  { %901 = vmatpush3.bf16.msra.mxu1 %v996_v12 }
  0x13   :  { %871 = vmatpush3.bf16.msra.mxu0 %v978_v5  ;;  %902 = vmatprep.subr.bf16.mxu1 %v998_v14  ;;  %v1220_v5 = vld [vmem:[%s1291_s5] ss:$0 sm:$0xff] }
  0x14   :  { %872 = vmatprep.subr.bf16.mxu0 %v979_v6 }
  0x16   :  { %903 = vmatpush3.bf16.msra.mxu1 %v998_v14 }
  0x17   :  { %873 = vmatpush3.bf16.msra.mxu0 %v979_v6  ;;  %904 = vmatprep.subr.bf16.mxu1 %v1000_v18 }
  0x18   :  { %874 = vmatprep.subr.bf16.mxu0 %v980_v9 }
  0x1a   :  { %905 = vmatpush3.bf16.msra.mxu1 %v1000_v18 }
  0x1b   :  { %875 = vmatpush3.bf16.msra.mxu0 %v980_v9  ;;  %906 = vmatprep.subr.bf16.mxu1 %v1002_v28 }
  0x1c   :  { %876 = vmatprep.subr.bf16.mxu0 %v981_v11 }
  0x1e   :  { %907 = vmatpush3.bf16.msra.mxu1 %v1002_v28 }
  0x1f   :  { %877 = vmatpush3.bf16.msra.mxu0 %v981_v11  ;;  %908 = vmatprep.subr.bf16.mxu1 %v1004_v30 }
  0x20   :  { %926 = vmatprep.subr.bf16.mxu0 %v1091_v13 }
  0x22   :  { %879 = vmatmul.mubr.bf16.vlgmr.msra.gmra.mxu0 %v983_v15  ;;  %909 = vmatpush3.bf16.msra.mxu1 %v1004_v30 }
  0x23   :  { %882 = vmatprep.mubr.bf16.mxu0 %v984_v16  ;;  %927 = vmatpush3.bf16.msra.mxu0 %v1091_v13 }
  0x24   :  { %928 = vmatprep.subr.bf16.mxu0 %v1106_v17  ;;  %958 = vmatprep.subr.bf16.mxu1 %v1091_v13 }
  0x27   :  { %929 = vmatpush3.bf16.msra.mxu0 %v1106_v17 }
  0x28   :  { %930 = vmatprep.subr.bf16.mxu0 %v1116_v19 }
  0x2a   :  { %883 = vmatmul.mubr.bf16.gmra.mxu0 %v985_v20 }
  0x2b   :  { %886 = vmatprep.mubr.bf16.mxu0 %v986_v21  ;;  %931 = vmatpush3.bf16.msra.mxu0 %v1116_v19 }
  0x2c   :  { %932 = vmatprep.subr.bf16.mxu0 %v1129_v22 }
  0x2f   :  { %933 = vmatpush3.bf16.msra.mxu0 %v1129_v22 }
  0x30   :  { %934 = vmatprep.subr.bf16.mxu0 %v1136_v23 }
  0x32   :  { %887 = vmatmul.mubr.bf16.gmra.mxu0 %v987_v24 }
  0x33   :  { %890 = vmatprep.mubr.bf16.mxu0 %v988_v25  ;;  %935 = vmatpush3.bf16.msra.mxu0 %v1136_v23 }
  0x34   :  { %936 = vmatprep.subr.bf16.mxu0 %v1149_v26 }
  0x37   :  { %937 = vmatpush3.bf16.msra.mxu0 %v1149_v26 }
  0x38   :  { %938 = vmatprep.subr.bf16.mxu0 %v1163_v29 }
  0x3a   :  { %891 = vmatmul.mubr.bf16.gmra.mxu0 %v989_v27 }
  0x3b   :  { %939 = vmatpush3.bf16.msra.mxu0 %v1163_v29  ;;  %942 = vmatprep.mubr.bf16.mxu0 %v1006_v32 }
  0x3c   :  { %940 = vmatprep.subr.bf16.mxu0 %v1173_v31 }
  0x3f   :  { %941 = vmatpush3.bf16.msra.mxu0 %v1173_v31 }
  0x42   :  { %943 = vmatmul.mubr.bf16.vlgmr.msra.gmra.mxu0 %v1007_v33 }
  0x43   :  { %946 = vmatprep.mubr.bf16.mxu0 %v1008_v34 }
  0x4a   :  { %947 = vmatmul.mubr.bf16.gmra.mxu0 %v1009_v35 }
  0xe2   :  { %v880_v36 = vpop.f32.mrf.mxu0 }
  0xe4   :  { %v222_v37 = vpop.f32.mrf.mxu0 }
  0xe6   :  { %v881_v38 = vpop.f32.mrf.mxu0 }
  0xe7   :  { %v337_v41 = vpack.c.bf16 %v881_v38, %v880_v36 }
  0xe8   :  { %v225_v39 = vpop.f32.mrf.mxu0 }
  0xe9   :  { %v336_v40 = vpack.c.bf16 %v225_v39, %v222_v37 }
  0xea   :  { %v884_v42 = vpop.f32.mrf.mxu0 }
  0xeb   :  { %910 = vmatprep.mubr.bf16.mxu1 %v336_v40 }
  0xec   :  { %v238_v43 = vpop.f32.mrf.mxu0  ;;  %911 = vmatmul.mubr.bf16.vlgmr.msra.gmra.mxu1 %v337_v41 }
  0xed   :  { %966 = vmatpush3.bf16.msra.mxu1 %v1091_v13 }
  0xee   :  { %v885_v44 = vpop.f32.mrf.mxu0  ;;  %959 = vmatprep.subr.bf16.mxu1 %v1106_v17 }
  0xef   :  { %v339_v47 = vpack.c.bf16 %v885_v44, %v884_v42 }
  0xf0   :  { %v241_v45 = vpop.f32.mrf.mxu0 }
  0xf1   :  { %v338_v46 = vpack.c.bf16 %v241_v45, %v238_v43  ;;  %967 = vmatpush3.bf16.msra.mxu1 %v1106_v17 }
  0xf2   :  { %v888_v48 = vpop.f32.mrf.mxu0  ;;  %960 = vmatprep.subr.bf16.mxu1 %v1116_v19 }
  0xf3   :  { %914 = vmatprep.mubr.bf16.mxu1 %v338_v46 }
  0xf4   :  { %v254_v49 = vpop.f32.mrf.mxu0  ;;  %915 = vmatmul.mubr.bf16.gmra.mxu1 %v339_v47 }
  0xf5   :  { %968 = vmatpush3.bf16.msra.mxu1 %v1116_v19 }
  0xf6   :  { %v889_v50 = vpop.f32.mrf.mxu0  ;;  %961 = vmatprep.subr.bf16.mxu1 %v1129_v22 }
  0xf7   :  { %v341_v53 = vpack.c.bf16 %v889_v50, %v888_v48 }
  0xf8   :  { %v257_v51 = vpop.f32.mrf.mxu0 }
  0xf9   :  { %v340_v52 = vpack.c.bf16 %v257_v51, %v254_v49  ;;  %969 = vmatpush3.bf16.msra.mxu1 %v1129_v22 }
  0xfa   :  { %v892_v54 = vpop.f32.mrf.mxu0  ;;  %962 = vmatprep.subr.bf16.mxu1 %v1136_v23 }
  0xfb   :  { %918 = vmatprep.mubr.bf16.mxu1 %v340_v52 }
  0xfc   :  { %v270_v55 = vpop.f32.mrf.mxu0  ;;  %919 = vmatmul.mubr.bf16.gmra.mxu1 %v341_v53 }
  0xfd   :  { %970 = vmatpush3.bf16.msra.mxu1 %v1136_v23 }
  0xfe   :  { %v893_v56 = vpop.f32.mrf.mxu0  ;;  %963 = vmatprep.subr.bf16.mxu1 %v1149_v26 }
  0xff   :  { %v343_v60 = vpack.c.bf16 %v893_v56, %v892_v54 }
 0x100   :  { %v273_v57 = vpop.f32.mrf.mxu0 }
 0x101   :  { %v342_v58 = vpack.c.bf16 %v273_v57, %v270_v55  ;;  %971 = vmatpush3.bf16.msra.mxu1 %v1149_v26 }
 0x102   :  { %964 = vmatprep.subr.bf16.mxu1 %v1163_v29  ;;  %v944_v0 = vpop.f32.mrf.mxu0 }
 0x103   :  { %922 = vmatprep.mubr.bf16.mxu1 %v342_v58 }
 0x104   :  { %923 = vmatmul.mubr.bf16.gmra.mxu1 %v343_v60  ;;  %v667_v1 = vpop.f32.mrf.mxu0 }
 0x105   :  { %972 = vmatpush3.bf16.msra.mxu1 %v1163_v29  ;;  %950 = vmatprep.mubr.bf16.mxu1 %v1010_v59 }
 0x106   :  { %965 = vmatprep.subr.bf16.mxu1 %v1173_v31  ;;  %v945_v2 = vpop.f32.mrf.mxu0 }
 0x108   :  { %v670_v3 = vpop.f32.mrf.mxu0 }
 0x109   :  { %973 = vmatpush3.bf16.msra.mxu1 %v1173_v31 }
 0x10a   :  { %v948_v6 = vpop.f32.mrf.mxu0 }
 0x10c   :  { %951 = vmatmul.mubr.bf16.vlgmr.msra.gmra.mxu1 %v1011_v61  ;;  %v683_v12 = vpop.f32.mrf.mxu0 }
 0x10d   :  { %954 = vmatprep.mubr.bf16.mxu1 %v1012_v62 }
 0x10e   :  { %v949_v19 = vpop.f32.mrf.mxu0 }
 0x110   :  { %v686_v26 = vpop.f32.mrf.mxu0 }
 0x114   :  { %955 = vmatmul.mubr.bf16.gmra.mxu1 %v1013_v63 }
 0x1ac   :  { %v912_v4 = vpop.f32.mrf.mxu1 }
 0x1ad   :  { %v676_v7 = vadd.f32 %v944_v0, %v912_v4 }
 0x1ae   :  { %v474_v8 = vpop.f32.mrf.mxu1 }
 0x1af   :  { %v739_v9 = vadd.f32 %v1220_v5, %v676_v7  ;;  %v668_v10 = vadd.f32 %v667_v1, %v474_v8 }
 0x1b0   :  { %v913_v11 = vpop.f32.mrf.mxu1 }
 0x1b1   :  { %755 = vst [vmem:[%s1292_s6 + $0x10] sm:$0xff] %v739_v9  ;;  %v737_v13 = vadd.f32 %v1220_v5, %v668_v10  ;;  %v679_v14 = vadd.f32 %v945_v2, %v913_v11 }
 0x1b2   :  { %v477_v15 = vpop.f32.mrf.mxu1 }
 0x1b3   :  { %753 = vst [vmem:[%s1292_s6] sm:$0xff] %v737_v13  ;;  %v740_v16 = vadd.f32 %v1220_v5, %v679_v14  ;;  %v671_v17 = vadd.f32 %v670_v3, %v477_v15 }
 0x1b4   :  { %v916_v18 = vpop.f32.mrf.mxu1 }
 0x1b5   :  { %756 = vst [vmem:[%s1292_s6 + $0x18] sm:$0xff] %v740_v16  ;;  %v738_v20 = vadd.f32 %v1220_v5, %v671_v17  ;;  %v692_v21 = vadd.f32 %v948_v6, %v916_v18 }
 0x1b6   :  { %v490_v22 = vpop.f32.mrf.mxu1 }
 0x1b7   :  { %754 = vst [vmem:[%s1292_s6 + $0x8] sm:$0xff] %v738_v20  ;;  %v743_v23 = vadd.f32 %v1220_v5, %v692_v21  ;;  %v684_v24 = vadd.f32 %v683_v12, %v490_v22 }
 0x1b8   :  { %v917_v25 = vpop.f32.mrf.mxu1 }
 0x1b9   :  { %759 = vst [vmem:[%s1292_s6 + $0x30] sm:$0xff] %v743_v23  ;;  %v741_v27 = vadd.f32 %v1220_v5, %v684_v24  ;;  %v695_v28 = vadd.f32 %v949_v19, %v917_v25 }
 0x1ba   :  { %v493_v29 = vpop.f32.mrf.mxu1 }
 0x1bb   :  { %757 = vst [vmem:[%s1292_s6 + $0x20] sm:$0xff] %v741_v27  ;;  %v744_v30 = vadd.f32 %v1220_v5, %v695_v28  ;;  %v687_v31 = vadd.f32 %v686_v26, %v493_v29 }
 0x1bc   :  { %v920_v32 = vpop.f32.mrf.mxu1 }
 0x1bd   :  { %760 = vst [vmem:[%s1292_s6 + $0x38] sm:$0xff] %v744_v30  ;;  %v742_v33 = vadd.f32 %v1220_v5, %v687_v31 }
 0x1be   :  { %v506_v34 = vpop.f32.mrf.mxu1 }
 0x1bf   :  { %758 = vst [vmem:[%s1292_s6 + $0x28] sm:$0xff] %v742_v33 }
 0x1c0   :  { %v921_v35 = vpop.f32.mrf.mxu1 }
 0x1c2   :  { %v509_v36 = vpop.f32.mrf.mxu1 }
 0x1c4   :  { %v924_v37 = vpop.f32.mrf.mxu1 }
 0x1c6   :  { %v522_v38 = vpop.f32.mrf.mxu1 }
 0x1c8   :  { %v925_v39 = vpop.f32.mrf.mxu1 }
 0x1ca   :  { %v525_v40 = vpop.f32.mrf.mxu1 }
 0x1cc   :  { %v952_v41 = vpop.f32.mrf.mxu1 }
 0x1cd   :  { %v708_v42 = vadd.f32 %v952_v41, %v920_v32 }
 0x1ce   :  { %v699_v43 = vpop.f32.mrf.mxu1 }
 0x1cf   :  { %v747_v44 = vadd.f32 %v1220_v5, %v708_v42  ;;  %v700_v45 = vadd.f32 %v699_v43, %v506_v34 }
 0x1d0   :  { %v953_v46 = vpop.f32.mrf.mxu1 }
 0x1d1   :  { %763 = vst [vmem:[%s1292_s6 + $0x50] sm:$0xff] %v747_v44  ;;  %v745_v47 = vadd.f32 %v1220_v5, %v700_v45  ;;  %v711_v48 = vadd.f32 %v953_v46, %v921_v35 }
 0x1d2   :  { %v702_v49 = vpop.f32.mrf.mxu1 }
 0x1d3   :  { %761 = vst [vmem:[%s1292_s6 + $0x40] sm:$0xff] %v745_v47  ;;  %v748_v50 = vadd.f32 %v1220_v5, %v711_v48  ;;  %v703_v51 = vadd.f32 %v702_v49, %v509_v36 }
 0x1d4   :  { %v956_v52 = vpop.f32.mrf.mxu1 }
 0x1d5   :  { %764 = vst [vmem:[%s1292_s6 + $0x58] sm:$0xff] %v748_v50  ;;  %v746_v53 = vadd.f32 %v1220_v5, %v703_v51  ;;  %v724_v54 = vadd.f32 %v956_v52, %v924_v37 }
 0x1d6   :  { %v715_v55 = vpop.f32.mrf.mxu1 }
 0x1d7   :  { %762 = vst [vmem:[%s1292_s6 + $0x48] sm:$0xff] %v746_v53  ;;  %v751_v56 = vadd.f32 %v1220_v5, %v724_v54  ;;  %v716_v57 = vadd.f32 %v715_v55, %v522_v38 }
 0x1d8   :  { %v957_v58 = vpop.f32.mrf.mxu1 }
 0x1d9   :  { %767 = vst [vmem:[%s1292_s6 + $0x70] sm:$0xff] %v751_v56  ;;  %v749_v59 = vadd.f32 %v1220_v5, %v716_v57  ;;  %v727_v60 = vadd.f32 %v957_v58, %v925_v39 }
 0x1da   :  { %v718_v61 = vpop.f32.mrf.mxu1 }
 0x1db   :  { %765 = vst [vmem:[%s1292_s6 + $0x60] sm:$0xff] %v749_v59  ;;  %v752_v62 = vadd.f32 %v1220_v5, %v727_v60  ;;  %v719_v63 = vadd.f32 %v718_v61, %v525_v40 }
 0x1dd   :  { %768 = vst [vmem:[%s1292_s6 + $0x78] sm:$0xff] %v752_v62  ;;  %v750_v0 = vadd.f32 %v1220_v5, %v719_v63 }
 0x1df   :  { %766 = vst [vmem:[%s1292_s6 + $0x68] sm:$0xff] %v750_v0 }

// kernel: graphsage_forward.2
= control target key start
LH: loop header
LB: loop body
LE: loop exit
PB: predicated region body
PF: predicated region fallthrough
CT: control target
= control target key end

     0   :  { %s1421_s2 = inlined_call_operand.vmem [shape: bf16[128,128], index: 2, kind: input, shape index: {}, may-alias: {1,2}]   ;;  %s1422_s0 = inlined_call_operand.vmem [shape: bf16[128,128], index: 0, kind: input, shape index: {}]   ;;  %s1423_s4 = inlined_call_operand.vmem [shape: bf16[128,128], index: 4, kind: input, shape index: {}]   ;;  %s1424_s3 = inlined_call_operand.vmem [shape: bf16[128,128], index: 3, kind: input, shape index: {}]   ;;  %s1425_s1 = inlined_call_operand.vmem [shape: bf16[128,128], index: 1, kind: input, shape index: {}, may-alias: {1,2}]   ;;  %s1426_s5 = inlined_call_operand.vmem [shape: f32[1,128], index: 5, kind: input, shape index: {}]   ;;  %s1427_s6 = inlined_call_operand.vmem [shape: bf16[128,128], index: 6, kind: output, shape index: {}]  }
   0x1   :  { %v1133_v0 = vld [vmem:[%s1421_s2 + $0x38] sm:$0xff]   ;;  %v1134_v1 = vld [vmem:[%s1421_s2 + $0x30] sm:$0xff]   ;;  %v1135_v2 = vld [vmem:[%s1421_s2 + $0x28] sm:$0xff]  }
   0x2   :  { %1021 = vmatprep.subr.bf16.mxu0 %v1133_v0  ;;  %v1136_v3 = vld [vmem:[%s1421_s2 + $0x20] sm:$0xff]   ;;  %v1137_v5 = vld [vmem:[%s1421_s2 + $0x18] sm:$0xff]   ;;  %v1138_v6 = vld [vmem:[%s1421_s2 + $0x10] sm:$0xff]  }
   0x3   :  { %1022 = vmatpush3.bf16.msra.mxu0 %v1133_v0  ;;  %v1141_v4 = vld [vmem:[%s1422_s0] sm:$0xff]   ;;  %v1149_v7 = vld [vmem:[%s1423_s4 + $0x38] sm:$0xff]   ;;  %v1151_v8 = vld [vmem:[%s1423_s4 + $0x30] sm:$0xff]  }
   0x4   :  { %1023 = vmatprep.subr.bf16.mxu0 %v1134_v1  ;;  %1037 = vmatprep.mubr.bf16.mxu0 %v1141_v4  ;;  %v1139_v9 = vld [vmem:[%s1421_s2 + $0x8] sm:$0xff]   ;;  %v1140_v11 = vld [vmem:[%s1421_s2] sm:$0xff]   ;;  %v1250_v13 = vld [vmem:[%s1424_s3 + $0x38] sm:$0xff]  }
   0x5   :  { %1053 = vmatprep.subr.bf16.mxu1 %v1149_v7  ;;  %v1153_v10 = vld [vmem:[%s1423_s4 + $0x28] sm:$0xff]   ;;  %v1155_v12 = vld [vmem:[%s1423_s4 + $0x20] sm:$0xff]   ;;  %v1157_v14 = vld [vmem:[%s1423_s4 + $0x18] sm:$0xff]  }
   0x6   :  { %1054 = vmatpush3.bf16.msra.mxu1 %v1149_v7  ;;  %v1142_v15 = vld [vmem:[%s1422_s0 + $0x8] sm:$0xff]   ;;  %v1143_v16 = vld [vmem:[%s1422_s0 + $0x10] sm:$0xff]   ;;  %v1144_v20 = vld [vmem:[%s1422_s0 + $0x18] sm:$0xff]  }
   0x7   :  { %1024 = vmatpush3.bf16.msra.mxu0 %v1134_v1  ;;  %1055 = vmatprep.subr.bf16.mxu1 %v1151_v8  ;;  %v1265_v17 = vld [vmem:[%s1424_s3 + $0x30] sm:$0xff]   ;;  %v1275_v19 = vld [vmem:[%s1424_s3 + $0x28] sm:$0xff]   ;;  %v1145_v21 = vld [vmem:[%s1422_s0 + $0x20] sm:$0xff]  }
   0x8   :  { %1025 = vmatprep.subr.bf16.mxu0 %v1135_v2  ;;  %v1159_v18 = vld [vmem:[%s1423_s4 + $0x10] sm:$0xff]   ;;  %v1288_v22 = vld [vmem:[%s1424_s3 + $0x20] sm:$0xff]   ;;  %v1295_v23 = vld [vmem:[%s1424_s3 + $0x18] sm:$0xff]  }
   0x9   :  { %v1146_v24 = vld [vmem:[%s1422_s0 + $0x28] sm:$0xff]   ;;  %v1147_v25 = vld [vmem:[%s1422_s0 + $0x30] sm:$0xff]   ;;  %v1148_v27 = vld [vmem:[%s1422_s0 + $0x38] sm:$0xff]  }
   0xa   :  { %1056 = vmatpush3.bf16.msra.mxu1 %v1151_v8  ;;  %v1308_v26 = vld [vmem:[%s1424_s3 + $0x10] sm:$0xff]   ;;  %v1161_v28 = vld [vmem:[%s1423_s4 + $0x8] sm:$0xff]   ;;  %v1163_v30 = vld [vmem:[%s1423_s4] sm:$0xff]  }
   0xb   :  { %1026 = vmatpush3.bf16.msra.mxu0 %v1135_v2  ;;  %1057 = vmatprep.subr.bf16.mxu1 %v1153_v10  ;;  %v1322_v29 = vld [vmem:[%s1424_s3 + $0x8] sm:$0xff]   ;;  %v1332_v31 = vld [vmem:[%s1424_s3] sm:$0xff]   ;;  %v1167_v34 = vld [vmem:[%s1425_s1 + $0x10] sm:$0xff]  }
   0xc   :  { %1027 = vmatprep.subr.bf16.mxu0 %v1136_v3  ;;  %v1165_v32 = vld [vmem:[%s1425_s1] sm:$0xff]   ;;  %v1166_v33 = vld [vmem:[%s1425_s1 + $0x8] sm:$0xff]   ;;  %v1168_v35 = vld [vmem:[%s1425_s1 + $0x18] sm:$0xff]  }
   0xd   :  { %v1169_v59 = vld [vmem:[%s1425_s1 + $0x20] sm:$0xff]   ;;  %v1170_v61 = vld [vmem:[%s1425_s1 + $0x28] sm:$0xff]   ;;  %v1171_v62 = vld [vmem:[%s1425_s1 + $0x30] sm:$0xff]  }
   0xe   :  { %1058 = vmatpush3.bf16.msra.mxu1 %v1153_v10  ;;  %v1172_v63 = vld [vmem:[%s1425_s1 + $0x38] sm:$0xff]   ;;  %v1379_v7 = vld [vmem:[%s1426_s5] ss:$0 sm:$0xff] }
   0xf   :  { %1028 = vmatpush3.bf16.msra.mxu0 %v1136_v3  ;;  %1059 = vmatprep.subr.bf16.mxu1 %v1155_v12 }
  0x10   :  { %1029 = vmatprep.subr.bf16.mxu0 %v1137_v5 }
  0x12   :  { %1060 = vmatpush3.bf16.msra.mxu1 %v1155_v12 }
  0x13   :  { %1030 = vmatpush3.bf16.msra.mxu0 %v1137_v5  ;;  %1061 = vmatprep.subr.bf16.mxu1 %v1157_v14 }
  0x14   :  { %1031 = vmatprep.subr.bf16.mxu0 %v1138_v6 }
  0x16   :  { %1062 = vmatpush3.bf16.msra.mxu1 %v1157_v14 }
  0x17   :  { %1032 = vmatpush3.bf16.msra.mxu0 %v1138_v6  ;;  %1063 = vmatprep.subr.bf16.mxu1 %v1159_v18 }
  0x18   :  { %1033 = vmatprep.subr.bf16.mxu0 %v1139_v9 }
  0x1a   :  { %1064 = vmatpush3.bf16.msra.mxu1 %v1159_v18 }
  0x1b   :  { %1034 = vmatpush3.bf16.msra.mxu0 %v1139_v9  ;;  %1065 = vmatprep.subr.bf16.mxu1 %v1161_v28 }
  0x1c   :  { %1035 = vmatprep.subr.bf16.mxu0 %v1140_v11 }
  0x1e   :  { %1066 = vmatpush3.bf16.msra.mxu1 %v1161_v28 }
  0x1f   :  { %1036 = vmatpush3.bf16.msra.mxu0 %v1140_v11  ;;  %1067 = vmatprep.subr.bf16.mxu1 %v1163_v30 }
  0x20   :  { %1085 = vmatprep.subr.bf16.mxu0 %v1250_v13 }
  0x22   :  { %1038 = vmatmul.mubr.bf16.vlgmr.msra.gmra.mxu0 %v1142_v15  ;;  %1068 = vmatpush3.bf16.msra.mxu1 %v1163_v30 }
  0x23   :  { %1041 = vmatprep.mubr.bf16.mxu0 %v1143_v16  ;;  %1086 = vmatpush3.bf16.msra.mxu0 %v1250_v13 }
  0x24   :  { %1087 = vmatprep.subr.bf16.mxu0 %v1265_v17  ;;  %1117 = vmatprep.subr.bf16.mxu1 %v1250_v13 }
  0x27   :  { %1088 = vmatpush3.bf16.msra.mxu0 %v1265_v17 }
  0x28   :  { %1089 = vmatprep.subr.bf16.mxu0 %v1275_v19 }
  0x2a   :  { %1042 = vmatmul.mubr.bf16.gmra.mxu0 %v1144_v20 }
  0x2b   :  { %1045 = vmatprep.mubr.bf16.mxu0 %v1145_v21  ;;  %1090 = vmatpush3.bf16.msra.mxu0 %v1275_v19 }
  0x2c   :  { %1091 = vmatprep.subr.bf16.mxu0 %v1288_v22 }
  0x2f   :  { %1092 = vmatpush3.bf16.msra.mxu0 %v1288_v22 }
  0x30   :  { %1093 = vmatprep.subr.bf16.mxu0 %v1295_v23 }
  0x32   :  { %1046 = vmatmul.mubr.bf16.gmra.mxu0 %v1146_v24 }
  0x33   :  { %1049 = vmatprep.mubr.bf16.mxu0 %v1147_v25  ;;  %1094 = vmatpush3.bf16.msra.mxu0 %v1295_v23 }
  0x34   :  { %1095 = vmatprep.subr.bf16.mxu0 %v1308_v26 }
  0x37   :  { %1096 = vmatpush3.bf16.msra.mxu0 %v1308_v26 }
  0x38   :  { %1097 = vmatprep.subr.bf16.mxu0 %v1322_v29 }
  0x3a   :  { %1050 = vmatmul.mubr.bf16.gmra.mxu0 %v1148_v27 }
  0x3b   :  { %1098 = vmatpush3.bf16.msra.mxu0 %v1322_v29  ;;  %1101 = vmatprep.mubr.bf16.mxu0 %v1165_v32 }
  0x3c   :  { %1099 = vmatprep.subr.bf16.mxu0 %v1332_v31 }
  0x3f   :  { %1100 = vmatpush3.bf16.msra.mxu0 %v1332_v31 }
  0x42   :  { %1102 = vmatmul.mubr.bf16.vlgmr.msra.gmra.mxu0 %v1166_v33 }
  0x43   :  { %1105 = vmatprep.mubr.bf16.mxu0 %v1167_v34 }
  0x4a   :  { %1106 = vmatmul.mubr.bf16.gmra.mxu0 %v1168_v35 }
  0xe2   :  { %v1039_v36 = vpop.f32.mrf.mxu0 }
  0xe4   :  { %v222_v37 = vpop.f32.mrf.mxu0 }
  0xe6   :  { %v1040_v38 = vpop.f32.mrf.mxu0 }
  0xe7   :  { %v337_v41 = vpack.c.bf16 %v1040_v38, %v1039_v36 }
  0xe8   :  { %v225_v39 = vpop.f32.mrf.mxu0 }
  0xe9   :  { %v336_v40 = vpack.c.bf16 %v225_v39, %v222_v37 }
  0xea   :  { %v1043_v42 = vpop.f32.mrf.mxu0 }
  0xeb   :  { %1069 = vmatprep.mubr.bf16.mxu1 %v336_v40 }
  0xec   :  { %v238_v43 = vpop.f32.mrf.mxu0  ;;  %1070 = vmatmul.mubr.bf16.vlgmr.msra.gmra.mxu1 %v337_v41 }
  0xed   :  { %1125 = vmatpush3.bf16.msra.mxu1 %v1250_v13 }
  0xee   :  { %v1044_v44 = vpop.f32.mrf.mxu0  ;;  %1118 = vmatprep.subr.bf16.mxu1 %v1265_v17 }
  0xef   :  { %v339_v47 = vpack.c.bf16 %v1044_v44, %v1043_v42 }
  0xf0   :  { %v241_v45 = vpop.f32.mrf.mxu0 }
  0xf1   :  { %v338_v46 = vpack.c.bf16 %v241_v45, %v238_v43  ;;  %1126 = vmatpush3.bf16.msra.mxu1 %v1265_v17 }
  0xf2   :  { %v1047_v48 = vpop.f32.mrf.mxu0  ;;  %1119 = vmatprep.subr.bf16.mxu1 %v1275_v19 }
  0xf3   :  { %1073 = vmatprep.mubr.bf16.mxu1 %v338_v46 }
  0xf4   :  { %v254_v49 = vpop.f32.mrf.mxu0  ;;  %1074 = vmatmul.mubr.bf16.gmra.mxu1 %v339_v47 }
  0xf5   :  { %1127 = vmatpush3.bf16.msra.mxu1 %v1275_v19 }
  0xf6   :  { %v1048_v50 = vpop.f32.mrf.mxu0  ;;  %1120 = vmatprep.subr.bf16.mxu1 %v1288_v22 }
  0xf7   :  { %v341_v53 = vpack.c.bf16 %v1048_v50, %v1047_v48 }
  0xf8   :  { %v257_v51 = vpop.f32.mrf.mxu0 }
  0xf9   :  { %v340_v52 = vpack.c.bf16 %v257_v51, %v254_v49  ;;  %1128 = vmatpush3.bf16.msra.mxu1 %v1288_v22 }
  0xfa   :  { %v1051_v54 = vpop.f32.mrf.mxu0  ;;  %1121 = vmatprep.subr.bf16.mxu1 %v1295_v23 }
  0xfb   :  { %1077 = vmatprep.mubr.bf16.mxu1 %v340_v52 }
  0xfc   :  { %v270_v55 = vpop.f32.mrf.mxu0  ;;  %1078 = vmatmul.mubr.bf16.gmra.mxu1 %v341_v53 }
  0xfd   :  { %1129 = vmatpush3.bf16.msra.mxu1 %v1295_v23 }
  0xfe   :  { %v1052_v56 = vpop.f32.mrf.mxu0  ;;  %1122 = vmatprep.subr.bf16.mxu1 %v1308_v26 }
  0xff   :  { %v343_v60 = vpack.c.bf16 %v1052_v56, %v1051_v54 }
 0x100   :  { %v273_v57 = vpop.f32.mrf.mxu0 }
 0x101   :  { %v342_v58 = vpack.c.bf16 %v273_v57, %v270_v55  ;;  %1130 = vmatpush3.bf16.msra.mxu1 %v1308_v26 }
 0x102   :  { %1123 = vmatprep.subr.bf16.mxu1 %v1322_v29  ;;  %v1103_v0 = vpop.f32.mrf.mxu0 }
 0x103   :  { %1081 = vmatprep.mubr.bf16.mxu1 %v342_v58 }
 0x104   :  { %1082 = vmatmul.mubr.bf16.gmra.mxu1 %v343_v60  ;;  %v667_v1 = vpop.f32.mrf.mxu0 }
 0x105   :  { %1131 = vmatpush3.bf16.msra.mxu1 %v1322_v29  ;;  %1109 = vmatprep.mubr.bf16.mxu1 %v1169_v59 }
 0x106   :  { %1124 = vmatprep.subr.bf16.mxu1 %v1332_v31  ;;  %v1104_v2 = vpop.f32.mrf.mxu0 }
 0x108   :  { %v670_v3 = vpop.f32.mrf.mxu0 }
 0x109   :  { %1132 = vmatpush3.bf16.msra.mxu1 %v1332_v31 }
 0x10a   :  { %v1107_v5 = vpop.f32.mrf.mxu0 }
 0x10c   :  { %1110 = vmatmul.mubr.bf16.vlgmr.msra.gmra.mxu1 %v1170_v61  ;;  %v683_v11 = vpop.f32.mrf.mxu0 }
 0x10d   :  { %1113 = vmatprep.mubr.bf16.mxu1 %v1171_v62 }
 0x10e   :  { %v1108_v19 = vpop.f32.mrf.mxu0 }
 0x110   :  { %v686_v30 = vpop.f32.mrf.mxu0 }
 0x114   :  { %1114 = vmatmul.mubr.bf16.gmra.mxu1 %v1172_v63 }
 0x1ac   :  { %v1071_v4 = vpop.f32.mrf.mxu1 }
 0x1ad   :  { %v676_v6 = vadd.f32 %v1103_v0, %v1071_v4 }
 0x1ae   :  { %v474_v8 = vpop.f32.mrf.mxu1 }
 0x1af   :  { %v668_v9 = vadd.f32 %v667_v1, %v474_v8  ;;  %v739_v12 = vadd.f32 %v1379_v7, %v676_v6 }
 0x1b0   :  { %v1072_v10 = vpop.f32.mrf.mxu1 }
 0x1b1   :  { %v679_v13 = vadd.f32 %v1104_v2, %v1072_v10  ;;  %v737_v15 = vadd.f32 %v1379_v7, %v668_v9  ;;  %v755_v20 = vmax.f32 %v739_v12, 0.0 }
 0x1b2   :  { %v477_v14 = vpop.f32.mrf.mxu1 }
 0x1b3   :  { %v740_v16 = vadd.f32 %v1379_v7, %v679_v13  ;;  %v671_v17 = vadd.f32 %v670_v3, %v477_v14  ;;  %v753_v25 = vmax.f32 %v737_v15, 0.0 }
 0x1b4   :  { %v1075_v18 = vpop.f32.mrf.mxu1 }
 0x1b5   :  { %v756_v21 = vmax.f32 %v740_v16, 0.0  ;;  %v738_v22 = vadd.f32 %v1379_v7, %v671_v17  ;;  %v692_v23 = vadd.f32 %v1107_v5, %v1075_v18 }
 0x1b6   :  { %v490_v24 = vpop.f32.mrf.mxu1 }
 0x1b7   :  { %v934_v26 = vpack.c.bf16 %v756_v21, %v755_v20  ;;  %v754_v27 = vmax.f32 %v738_v22, 0.0  ;;  %v684_v28 = vadd.f32 %v683_v11, %v490_v24  ;;  %v743_v32 = vadd.f32 %v1379_v7, %v692_v23 }
 0x1b8   :  { %v1076_v29 = vpop.f32.mrf.mxu1 }
 0x1b9   :  { %966 = vst [vmem:[%s1427_s6 + $0x8] sm:$0xff] %v934_v26   ;;  %v929_v31 = vpack.c.bf16 %v754_v27, %v753_v25  ;;  %v695_v33 = vadd.f32 %v1108_v19, %v1076_v29  ;;  %v741_v35 = vadd.f32 %v1379_v7, %v684_v28  ;;  %v759_v39 = vmax.f32 %v743_v32, 0.0 }
 0x1ba   :  { %v493_v34 = vpop.f32.mrf.mxu1 }
 0x1bb   :  { %930 = vst [vmem:[%s1427_s6] sm:$0xff] %v929_v31   ;;  %v744_v36 = vadd.f32 %v1379_v7, %v695_v33  ;;  %v687_v37 = vadd.f32 %v686_v30, %v493_v34  ;;  %v757_v43 = vmax.f32 %v741_v35, 0.0 }
 0x1bc   :  { %v1079_v38 = vpop.f32.mrf.mxu1 }
 0x1bd   :  { %v760_v40 = vmax.f32 %v744_v36, 0.0  ;;  %v742_v41 = vadd.f32 %v1379_v7, %v687_v37 }
 0x1be   :  { %v506_v42 = vpop.f32.mrf.mxu1 }
 0x1bf   :  { %v944_v44 = vpack.c.bf16 %v760_v40, %v759_v39  ;;  %v758_v45 = vmax.f32 %v742_v41, 0.0 }
 0x1c0   :  { %v1080_v46 = vpop.f32.mrf.mxu1 }
 0x1c1   :  { %968 = vst [vmem:[%s1427_s6 + $0x18] sm:$0xff] %v944_v44   ;;  %v939_v47 = vpack.c.bf16 %v758_v45, %v757_v43 }
 0x1c2   :  { %v509_v48 = vpop.f32.mrf.mxu1 }
 0x1c3   :  { %967 = vst [vmem:[%s1427_s6 + $0x10] sm:$0xff] %v939_v47  }
 0x1c4   :  { %v1083_v49 = vpop.f32.mrf.mxu1 }
 0x1c6   :  { %v522_v50 = vpop.f32.mrf.mxu1 }
 0x1c8   :  { %v1084_v51 = vpop.f32.mrf.mxu1 }
 0x1ca   :  { %v525_v52 = vpop.f32.mrf.mxu1 }
 0x1cc   :  { %v1111_v53 = vpop.f32.mrf.mxu1 }
 0x1cd   :  { %v708_v54 = vadd.f32 %v1111_v53, %v1079_v38 }
 0x1ce   :  { %v699_v55 = vpop.f32.mrf.mxu1 }
 0x1cf   :  { %v700_v56 = vadd.f32 %v699_v55, %v506_v42  ;;  %v747_v58 = vadd.f32 %v1379_v7, %v708_v54 }
 0x1d0   :  { %v1112_v57 = vpop.f32.mrf.mxu1 }
 0x1d1   :  { %v711_v59 = vadd.f32 %v1112_v57, %v1080_v46  ;;  %v745_v61 = vadd.f32 %v1379_v7, %v700_v56  ;;  %v763_v1 = vmax.f32 %v747_v58, 0.0 }
 0x1d2   :  { %v702_v60 = vpop.f32.mrf.mxu1 }
 0x1d3   :  { %v748_v62 = vadd.f32 %v1379_v7, %v711_v59  ;;  %v703_v63 = vadd.f32 %v702_v60, %v509_v48  ;;  %v761_v6 = vmax.f32 %v745_v61, 0.0 }
 0x1d4   :  { %v1115_v0 = vpop.f32.mrf.mxu1 }
 0x1d5   :  { %v764_v2 = vmax.f32 %v748_v62, 0.0  ;;  %v746_v3 = vadd.f32 %v1379_v7, %v703_v63  ;;  %v724_v4 = vadd.f32 %v1115_v0, %v1083_v49 }
 0x1d6   :  { %v715_v5 = vpop.f32.mrf.mxu1 }
 0x1d7   :  { %v954_v8 = vpack.c.bf16 %v764_v2, %v763_v1  ;;  %v762_v9 = vmax.f32 %v746_v3, 0.0  ;;  %v716_v10 = vadd.f32 %v715_v5, %v522_v50  ;;  %v751_v13 = vadd.f32 %v1379_v7, %v724_v4 }
 0x1d8   :  { %v1116_v11 = vpop.f32.mrf.mxu1 }
 0x1d9   :  { %970 = vst [vmem:[%s1427_s6 + $0x28] sm:$0xff] %v954_v8   ;;  %v949_v12 = vpack.c.bf16 %v762_v9, %v761_v6  ;;  %v727_v14 = vadd.f32 %v1116_v11, %v1084_v51  ;;  %v749_v16 = vadd.f32 %v1379_v7, %v716_v10  ;;  %v767_v19 = vmax.f32 %v751_v13, 0.0 }
 0x1da   :  { %v718_v15 = vpop.f32.mrf.mxu1 }
 0x1db   :  { %969 = vst [vmem:[%s1427_s6 + $0x20] sm:$0xff] %v949_v12   ;;  %v752_v17 = vadd.f32 %v1379_v7, %v727_v14  ;;  %v719_v18 = vadd.f32 %v718_v15, %v525_v52  ;;  %v765_v22 = vmax.f32 %v749_v16, 0.0 }
 0x1dd   :  { %v768_v20 = vmax.f32 %v752_v17, 0.0  ;;  %v750_v21 = vadd.f32 %v1379_v7, %v719_v18 }
 0x1df   :  { %v964_v23 = vpack.c.bf16 %v768_v20, %v767_v19  ;;  %v766_v24 = vmax.f32 %v750_v21, 0.0 }
 0x1e1   :  { %972 = vst [vmem:[%s1427_s6 + $0x38] sm:$0xff] %v964_v23   ;;  %v959_v25 = vpack.c.bf16 %v766_v24, %v765_v22 }
 0x1e3   :  { %971 = vst [vmem:[%s1427_s6 + $0x30] sm:$0xff] %v959_v25  }

</bundles_post_ra>
